<compile_context>
chip_gen: v7x
topology: tpu7x:2x2x1
jax: 0.10.0
libtpu: 0.0.40
codegen_flags: <defaults>
</compile_context>

<pallas_src>
import jax
import jax.numpy as jnp
from jax import lax
from jax.experimental import pallas as pl
from jax.experimental.pallas import tpu as pltpu


def _round_up(n, m):
    return ((n + m - 1) // m) * m


def _cdiv(a, b):
    return (a + b - 1) // b


def _mlp_kernel(xT_ref, w1t_ref, b1_ref, w2t_ref, b2_ref, w3_ref, b3_ref, o_ref):
    # Batch lives on the lane axis for the whole kernel; every intermediate is
    # lane-dense and no cross-layout relayouts are required.
    x0 = xT_ref[0:1, :]                       # (1, tb)   feature 0, lane-dense
    x1 = xT_ref[1:2, :]                       # (1, tb)   feature 1, lane-dense

    # Layer 1 (in=2 -> 64) on the VPU: K=2 would waste an MXU pass, so do two
    # column-broadcast multiply-adds instead.
    w1t = w1t_ref[...]                        # (64, 2)
    h1 = w1t[:, 0:1] * x0 + w1t[:, 1:2] * x1 + b1_ref[...]   # (64, tb)
    h1 = jnp.maximum(h1, 0.0)

    # Layer 2 (64 -> 32): the only matmul worth running on the MXU.
    h2 = jnp.dot(w2t_ref[...], h1, preferred_element_type=jnp.float32)  # (32, tb)
    h2 = jnp.maximum(h2 + b2_ref[...], 0.0)

    # Layer 3 (32 -> 1): VPU multiply + sublane (XLU) reduction over the 32
    # features; result is already a lane-dense (1, tb) row -> unmasked vst.
    o_ref[...] = jnp.sum(h2 * w3_ref[...], axis=0, keepdims=True) + b3_ref[...]


def mlp_forward(x, params, *, batch_tile=4096):
    """Fused MLP forward pass.

    x: (B, 2) float32
    params: w1 (2,64), b1 (64,), w2 (64,32), b2 (32,), w3 (32,1), b3 (1,)
            (weights stored as (in_features, out_features))
    Returns (B, 1) float32, matching PyTorch nn.Linear semantics (y = x @ W.T + b).
    """
    # Reorient weights/biases for the batch-on-lanes layout (features on sublanes).
    w1t = params["w1"].T                      # (64, 2)
    b1 = params["b1"].reshape(-1, 1)          # (64, 1)
    w2t = params["w2"].T                      # (32, 64)
    b2 = params["b2"].reshape(-1, 1)          # (32, 1)
    w3 = params["w3"].reshape(-1, 1)          # (32, 1)
    b3 = params["b3"].reshape(1, 1)           # (1, 1)

    B = x.shape[0]
    if B <= 128:
        # One lane-aligned tile (tb multiple of 128 -> unmasked stores).
        num_tiles = 1
        tb = 128
    elif B <= 512:
        # Two tiles so the parallel batch axis can shard across both
        # TensorCores on v7x (no effect on single-TC v5e/v6e).
        num_tiles = 2
        tb = _round_up(_cdiv(B, num_tiles), 128)
    else:
        # Large batch: few, big tiles; cdiv-first choice keeps padding small.
        num_tiles = max(2, _cdiv(B, batch_tile))
        tb = _round_up(_cdiv(B, num_tiles), 256)

    Bp = num_tiles * tb

    # Batch on the lane axis: (2, B) padded to (2, Bp).
    xT = x.T
    if Bp != B:
        xT = jnp.pad(xT, ((0, 0), (0, Bp - B)))

    # Weights/biases are tiny: replicate the full arrays to every grid step.
    def full(arr):
        nd = arr.ndim
        return pl.BlockSpec(arr.shape, lambda i, _nd=nd: (0,) * _nd)

    flops = 2 * B * (2 * 64 + 64 * 32 + 32)
    param_bytes = 4 * (2 * 64 + 64 + 64 * 32 + 32 + 32 + 1)
    cost = pl.CostEstimate(
        flops=flops,
        transcendentals=0,
        bytes_accessed=4 * (2 * B + B) + param_bytes,
    )

    out = pl.pallas_call(
        _mlp_kernel,
        # Lane-dense output: one (1, Bp) row, each grid step writes a tb-wide
        # lane window.
        out_shape=jax.ShapeDtypeStruct((1, Bp), jnp.float32),
        grid_spec=pltpu.PrefetchScalarGridSpec(
            num_scalar_prefetch=0,
            grid=(num_tiles,),
            in_specs=[
                pl.BlockSpec((2, tb), lambda i: (0, i)),   # x tile (lane-dense)
                full(w1t), full(b1),
                full(w2t), full(b2),
                full(w3), full(b3),
            ],
            out_specs=pl.BlockSpec((1, tb), lambda i: (0, i)),
        ),
        compiler_params=pltpu.CompilerParams(
            dimension_semantics=("parallel",),
        ),
        cost_estimate=cost,
    )(xT, w1t, b1, w2t, b2, w3, b3)

    return out.reshape(Bp, 1)[:B]


def init_params(key):
    """Deterministic init matching the PyTorch module's shapes.

    PyTorch stores Linear weights as (out, in); we store the transpose
    (in, out) so the reference does x @ W directly.
    """
    k1, k2, k3, k4, k5, k6 = jax.random.split(key, 6)

    def uniform(k, shape, fan_in):
        bound = 1.0 / jnp.sqrt(fan_in)
        return jax.random.uniform(k, shape, jnp.float32, -bound, bound)

    return {
        "w1": uniform(k1, (2, 64), 2),
        "b1": uniform(k2, (64,), 2),
        "w2": uniform(k3, (64, 32), 64),
        "b2": uniform(k4, (32,), 64),
        "w3": uniform(k5, (32, 1), 32),
        "b3": uniform(k6, (1,), 32),
    }


def mlp_reference(x, params):
    hi = lax.Precision.HIGHEST
    h1 = jnp.maximum(jnp.dot(x, params["w1"], precision=hi) + params["b1"], 0.0)
    h2 = jnp.maximum(jnp.dot(h1, params["w2"], precision=hi) + params["b2"], 0.0)
    return jnp.dot(h2, params["w3"], precision=hi) + params["b3"]


if __name__ == "__main__":
    key = jax.random.PRNGKey(0)
    pkey, k_small, k_mid, k_big = jax.random.split(key, 4)
    params = init_params(pkey)

    # Small batch (single 128-wide tile, grid of 1), mid batch (2-tile v7x
    # path), and a non-multiple larger batch (padding + multi-tile path).
    for batch, xkey in ((8, k_small), (300, k_mid), (1000, k_big)):
        x = jax.random.normal(xkey, (batch, 2), dtype=jnp.float32)
        out = jax.block_until_ready(mlp_forward(x, params))
        ref = mlp_reference(x, params)
        assert out.shape == (batch, 1), out.shape
        assert jnp.allclose(out, ref, atol=1e-5, rtol=1e-5), (
            batch, float(jnp.max(jnp.abs(out - ref))))

    print("KERNEL_OK")
</pallas_src>

<mosaic_0001>
module attributes {stable_mosaic.version = 11 : i64} {
  func.func @_mlp_kernel(%arg0: i32, %arg1: memref<2x128xf32, #tpu.memory_space<vmem>>, %arg2: memref<64x2xf32, #tpu.memory_space<vmem>>, %arg3: memref<64x1xf32, #tpu.memory_space<vmem>>, %arg4: memref<32x64xf32, #tpu.memory_space<vmem>>, %arg5: memref<32x1xf32, #tpu.memory_space<vmem>>, %arg6: memref<32x1xf32, #tpu.memory_space<vmem>>, %arg7: memref<1x1xf32, #tpu.memory_space<vmem>>, %arg8: memref<1x128xf32, #tpu.memory_space<vmem>>) attributes {dimension_semantics = [#tpu.dimension_semantics<parallel>], iteration_bounds = array<i64: 1>, scalar_prefetch = 0 : i64, scratch_operands = 0 : i64, tpu.core_type = #tpu.core_type<tc>, window_params = [{transform_indices = @transform_0, window_bounds = array<i64: 2, 128>}, {pipeline_mode = #tpu.pipeline_mode<synchronous>, transform_indices = @transform_1, window_bounds = array<i64: 64, 2>}, {pipeline_mode = #tpu.pipeline_mode<synchronous>, transform_indices = @transform_2, window_bounds = array<i64: 64, 1>}, {pipeline_mode = #tpu.pipeline_mode<synchronous>, transform_indices = @transform_3, window_bounds = array<i64: 32, 64>}, {pipeline_mode = #tpu.pipeline_mode<synchronous>, transform_indices = @transform_4, window_bounds = array<i64: 32, 1>}, {pipeline_mode = #tpu.pipeline_mode<synchronous>, transform_indices = @transform_5, window_bounds = array<i64: 32, 1>}, {pipeline_mode = #tpu.pipeline_mode<synchronous>, transform_indices = @transform_6, window_bounds = array<i64: 1, 1>}, {transform_indices = @transform_7, window_bounds = array<i64: 1, 128>}]} {
    %c0 = arith.constant 0 : index
    %c0_0 = arith.constant 0 : index
    %0 = vector.load %arg1[%c0, %c0_0] : memref<2x128xf32, #tpu.memory_space<vmem>>, vector<1x128xf32>
    %c1 = arith.constant 1 : index
    %c0_1 = arith.constant 0 : index
    %1 = vector.load %arg1[%c1, %c0_1] : memref<2x128xf32, #tpu.memory_space<vmem>>, vector<1x128xf32>
    %c0_2 = arith.constant 0 : index
    %c0_3 = arith.constant 0 : index
    %2 = vector.load %arg2[%c0_2, %c0_3] : memref<64x2xf32, #tpu.memory_space<vmem>>, vector<64x2xf32>
    %3 = vector.extract_strided_slice %2 {offsets = [0, 0], sizes = [64, 1], strides = [1, 1]} : vector<64x2xf32> to vector<64x1xf32>
    %4 = vector.broadcast %3 : vector<64x1xf32> to vector<64x128xf32>
    %5 = vector.broadcast %0 : vector<1x128xf32> to vector<64x128xf32>
    %6 = arith.mulf %4, %5 : vector<64x128xf32>
    %7 = vector.extract_strided_slice %2 {offsets = [0, 1], sizes = [64, 1], strides = [1, 1]} : vector<64x2xf32> to vector<64x1xf32>
    %8 = vector.broadcast %7 : vector<64x1xf32> to vector<64x128xf32>
    %9 = vector.broadcast %1 : vector<1x128xf32> to vector<64x128xf32>
    %10 = arith.mulf %8, %9 : vector<64x128xf32>
    %11 = arith.addf %6, %10 : vector<64x128xf32>
    %c0_4 = arith.constant 0 : index
    %c0_5 = arith.constant 0 : index
    %12 = vector.load %arg3[%c0_4, %c0_5] : memref<64x1xf32, #tpu.memory_space<vmem>>, vector<64x1xf32>
    %13 = vector.broadcast %12 : vector<64x1xf32> to vector<64x128xf32>
    %14 = arith.addf %11, %13 : vector<64x128xf32>
    %cst = arith.constant 0.000000e+00 : f32
    %15 = vector.broadcast %cst : f32 to vector<64x128xf32>
    %16 = arith.maximumf %14, %15 : vector<64x128xf32>
    %c0_6 = arith.constant 0 : index
    %c0_7 = arith.constant 0 : index
    %17 = vector.load %arg4[%c0_6, %c0_7] : memref<32x64xf32, #tpu.memory_space<vmem>>, vector<32x64xf32>
    %cst_8 = arith.constant dense<0.000000e+00> : vector<32x128xf32>
    %18 = tpu.matmul %17, %16, %cst_8 {dimension_numbers = #tpu.dot_dimension_numbers<[1], [0], [0], [1], [0, 0, 1, 1], [], []>} : vector<32x64xf32>, vector<64x128xf32>, vector<32x128xf32> -> vector<32x128xf32>
    %c0_9 = arith.constant 0 : index
    %c0_10 = arith.constant 0 : index
    %19 = vector.load %arg5[%c0_9, %c0_10] : memref<32x1xf32, #tpu.memory_space<vmem>>, vector<32x1xf32>
    %20 = vector.broadcast %19 : vector<32x1xf32> to vector<32x128xf32>
    %21 = arith.addf %18, %20 : vector<32x128xf32>
    %cst_11 = arith.constant 0.000000e+00 : f32
    %22 = vector.broadcast %cst_11 : f32 to vector<32x128xf32>
    %23 = arith.maximumf %21, %22 : vector<32x128xf32>
    %c0_12 = arith.constant 0 : index
    %c0_13 = arith.constant 0 : index
    %24 = vector.load %arg6[%c0_12, %c0_13] : memref<32x1xf32, #tpu.memory_space<vmem>>, vector<32x1xf32>
    %25 = vector.broadcast %24 : vector<32x1xf32> to vector<32x128xf32>
    %26 = arith.mulf %23, %25 : vector<32x128xf32>
    %cst_14 = arith.constant dense<0.000000e+00> : vector<128xf32>
    %27 = vector.multi_reduction <add>, %26, %cst_14 [0] : vector<32x128xf32> to vector<128xf32>
    %28 = vector.shape_cast %27 : vector<128xf32> to vector<1x128xf32>
    %c0_15 = arith.constant 0 : index
    %c0_16 = arith.constant 0 : index
    %29 = vector.load %arg7[%c0_15, %c0_16] : memref<1x1xf32, #tpu.memory_space<vmem>>, vector<1x1xf32>
    %30 = vector.broadcast %29 : vector<1x1xf32> to vector<1x128xf32>
    %31 = arith.addf %28, %30 : vector<1x128xf32>
    %c0_17 = arith.constant 0 : index
    %c0_18 = arith.constant 0 : index
    %32 = vector.load %arg8[%c0_17, %c0_18] : memref<1x128xf32, #tpu.memory_space<vmem>>, vector<1x128xf32>
    tpu.vector_store %arg8[%c0_17, %c0_18], %31 {strides = array<i32>} : memref<1x128xf32, #tpu.memory_space<vmem>>, vector<1x128xf32>,
    return
  }
  func.func @transform_0(%arg0: i32) -> (i32, i32) {
    %c0_i32 = arith.constant 0 : i32
    %c0_i32_0 = arith.constant 0 : i32
    return %c0_i32, %arg0 : i32, i32
  }
  func.func @transform_1(%arg0: i32) -> (i32, i32) {
    %c0_i32 = arith.constant 0 : i32
    %c0_i32_0 = arith.constant 0 : i32
    %c0_i32_1 = arith.constant 0 : i32
    return %c0_i32, %c0_i32_0 : i32, i32
  }
  func.func @transform_2(%arg0: i32) -> (i32, i32) {
    %c0_i32 = arith.constant 0 : i32
    %c0_i32_0 = arith.constant 0 : i32
    %c0_i32_1 = arith.constant 0 : i32
    return %c0_i32, %c0_i32_0 : i32, i32
  }
  func.func @transform_3(%arg0: i32) -> (i32, i32) {
    %c0_i32 = arith.constant 0 : i32
    %c0_i32_0 = arith.constant 0 : i32
    %c0_i32_1 = arith.constant 0 : i32
    return %c0_i32, %c0_i32_0 : i32, i32
  }
  func.func @transform_4(%arg0: i32) -> (i32, i32) {
    %c0_i32 = arith.constant 0 : i32
    %c0_i32_0 = arith.constant 0 : i32
    %c0_i32_1 = arith.constant 0 : i32
    return %c0_i32, %c0_i32_0 : i32, i32
  }
  func.func @transform_5(%arg0: i32) -> (i32, i32) {
    %c0_i32 = arith.constant 0 : i32
    %c0_i32_0 = arith.constant 0 : i32
    %c0_i32_1 = arith.constant 0 : i32
    return %c0_i32, %c0_i32_0 : i32, i32
  }
  func.func @transform_6(%arg0: i32) -> (i32, i32) {
    %c0_i32 = arith.constant 0 : i32
    %c0_i32_0 = arith.constant 0 : i32
    %c0_i32_1 = arith.constant 0 : i32
    return %c0_i32, %c0_i32_0 : i32, i32
  }
  func.func @transform_7(%arg0: i32) -> (i32, i32) {
    %c0_i32 = arith.constant 0 : i32
    %c0_i32_0 = arith.constant 0 : i32
    return %c0_i32, %arg0 : i32, i32
  }
}

</mosaic_0001>

<bundles_post_ra>
// kernel: tpu_custom_call.1
= control target key start
LH: loop header
LB: loop body
LE: loop exit
PB: predicated region body
PF: predicated region fallthrough
CT: control target
= control target key end

     0   :  { %s653_s0 = inlined_call_operand.vmem [shape: f32[2,128], index: 0, kind: input, shape index: {}]   ;;  %s654_s1 = inlined_call_operand.vmem [shape: f32[64,2], index: 1, kind: input, shape index: {}]   ;;  %s655_s2 = inlined_call_operand.vmem [shape: f32[64,1], index: 2, kind: input, shape index: {}]   ;;  %s656_s3 = inlined_call_operand.vmem [shape: f32[32,64], index: 3, kind: input, shape index: {}]   ;;  %s657_s4 = inlined_call_operand.vmem [shape: f32[32,1], index: 4, kind: input, shape index: {}]   ;;  %s658_s5 = inlined_call_operand.vmem [shape: f32[32,1], index: 5, kind: input, shape index: {}]   ;;  %s659_s6 = inlined_call_operand.<no memory space> [shape: f32[1,1], index: 6, kind: input, shape index: {}]   ;;  %s660_s7 = inlined_call_operand.hbm [shape: f32[1,128], index: 7, kind: output, shape index: {}]  }
   0x1   :  { %v12_v0 = vstv %s659_s6 }
   0x2   :  { %13 = vst [vmem:[#allocation2] sm:$0x1] %v12_v0 }
   0x3   :  { %v33_v1 = vld [vmem:[%s654_s1 + $0x10] sm:$0xff]  ;;  %v31_v2 = vld [vmem:[%s654_s1] sm:$0xff]  ;;  %v501_v3 = vmov 1   ;;  %v32_v5 = vld [vmem:[%s654_s1 + $0x8] sm:$0xff] }
   0x4   :  { %469 = vset.pattern.permute.xlu0 %v501_v3  ;;  %467 = vset.pattern.permute.xlu1 %v501_v3  ;;  %v35_v4 = vld [vmem:[%s654_s1 + $0x20] sm:$0xff]  ;;  %v37_v6 = vld [vmem:[%s654_s1 + $0x30] sm:$0xff]  ;;  %v34_v7 = vld [vmem:[%s654_s1 + $0x18] sm:$0xff] }
   0x5   :  { %100 = vperm.xlu0 %469, %v33_v1   ;;  %92 = vperm.xlu1 %467, %v31_v2  }
   0x9   :  { %108 = vperm.xlu0 %469, %v35_v4   ;;  %96 = vperm.xlu1 %467, %v32_v5  }
   0xa   :  { %14 = vsyncpa [#allocation4], 0  ;;  %v502_v8 = vmov 0   ;;  %v143_v9 = vld [vmem:[%s655_s2] sm:$0xff]  ;;  %v144_v10 = vld [vmem:[%s655_s2 + $0x8] sm:$0xff]  ;;  %vm235_vm0 = vcmask 523264  }
   0xb   :  { %v36_v11 = vld [vmem:[%s654_s1 + $0x28] sm:$0xff]  ;;  %v146_v12 = vld [vmem:[%s655_s2 + $0x18] sm:$0xff]  ;;  %v211_v14 = vld [vmem:[%s657_s4] sm:$0xff] }
   0xc   :  { %v148_v13 = vld [vmem:[%s655_s2 + $0x28] sm:$0xff]  ;;  %v145_v15 = vld [vmem:[%s655_s2 + $0x10] sm:$0xff]  ;;  %v337_v17 = vld [vmem:[%s658_s5] sm:$0xff] }
   0xd   :  { %116 = vperm.xlu0 %469, %v37_v6   ;;  %468 = vset.pattern.permute.xlu1 %v502_v8  ;;  %v213_v16 = vld [vmem:[%s657_s4 + $0x10] sm:$0xff]  ;;  %v38_v18 = vld [vmem:[%s654_s1 + $0x38] sm:$0xff]  ;;  %v374_v20 = vld [vmem:[#allocation2] sm:$0x1] }
   0xe   :  { %56 = vperm.xlu1 %468, %v34_v7   ;;  %v339_v19 = vld [vmem:[%s658_s5 + $0x10] sm:$0xff]  ;;  %v147_v21 = vld [vmem:[%s655_s2 + $0x20] sm:$0xff]  ;;  %v150_v23 = vld [vmem:[%s655_s2 + $0x38] sm:$0xff] }
   0xf   :  { %v149_v22 = vld [vmem:[%s655_s2 + $0x30] sm:$0xff]  ;;  %v212_v24 = vld [vmem:[%s657_s4 + $0x8] sm:$0xff]  ;;  %v214_v25 = vld [vmem:[%s657_s4 + $0x18] sm:$0xff] }
  0x10   :  { %v207_v26 = vld [vmem:[%s656_s3] sm:$0xff]  ;;  %v209_v27 = vld [vmem:[%s656_s3 + $0x10] sm:$0xff]  ;;  %v338_v28 = vld [vmem:[%s658_s5 + $0x8] sm:$0xff] }
  0x11   :  { %474 = vset.pattern.permute.xlu0 %v502_v8  ;;  %434 = vmatprep.mubr.msk.f32.mxu0 %vm235_vm0, %v207_v26  ;;  %v340_v29 = vld [vmem:[%s658_s5 + $0x18] sm:$0xff]  ;;  %v401_v38 = vld [vmem:[%s653_s0 + $0x1] ss:$0 sm:$0xff]  ;;  %v400_v39 = vld [vmem:[%s653_s0] ss:$0 sm:$0xff] }
  0x12   :  { %41 = vperm.xlu0 %474, %v31_v2   ;;  %470 = vset.pattern.permute.xlu1 %v501_v3 }
  0x13   :  { %104 = vperm.xlu1 %470, %v34_v7   ;;  %437 = vmatprep.mubr.msk.f32.mxu1 %vm235_vm0, %v209_v27 }
  0x16   :  { %46 = vperm.xlu0 %474, %v32_v5  }
  0x17   :  { %471 = vset.pattern.permute.xlu1 %v502_v8 }
  0x18   :  { %153 = vperm.xlu1 %471, %v143_v9  }
  0x1a   :  { %51 = vperm.xlu0 %474, %v33_v1  }
  0x1c   :  { %61 = vperm.xlu1 %471, %v35_v4  }
  0x1e   :  { %158 = vperm.xlu0 %474, %v144_v10  }
  0x20   :  { %66 = vperm.xlu1 %471, %v36_v11  }
  0x22   :  { %168 = vperm.xlu0 %474, %v146_v12  }
  0x24   :  { %472 = vset.pattern.permute.xlu1 %v501_v3 }
  0x25   :  { %112 = vperm.xlu1 %472, %v36_v11  }
  0x26   :  { %178 = vperm.xlu0 %474, %v148_v13  }
  0x29   :  { %473 = vset.pattern.permute.xlu1 %v502_v8 }
  0x2a   :  { %217 = vperm.xlu0 %474, %v211_v14   ;;  %163 = vperm.xlu1 %473, %v145_v15  }
  0x2e   :  { %227 = vperm.xlu0 %474, %v213_v16   ;;  %71 = vperm.xlu1 %473, %v37_v6  }
  0x32   :  { %343 = vperm.xlu0 %474, %v337_v17   ;;  %76 = vperm.xlu1 %473, %v38_v18  }
  0x36   :  { %353 = vperm.xlu0 %474, %v339_v19   ;;  %475 = vset.pattern.permute.xlu1 %v501_v3 }
  0x37   :  { %120 = vperm.xlu1 %475, %v38_v18  }
  0x3a   :  { %377 = vperm.xlu0 %474, %v374_v20  }
  0x3b   :  { %476 = vset.pattern.permute.xlu1 %v502_v8 }
  0x3c   :  { %173 = vperm.xlu1 %476, %v147_v21  }
  0x40   :  { %183 = vperm.xlu1 %476, %v149_v22  }
  0x44   :  { %188 = vperm.xlu1 %476, %v150_v23  }
  0x48   :  { %222 = vperm.xlu1 %476, %v212_v24  }
  0x4c   :  { %232 = vperm.xlu1 %476, %v214_v25  }
  0x50   :  { %348 = vperm.xlu1 %476, %v338_v28  }
  0x54   :  { %358 = vperm.xlu1 %476, %v340_v29  }
  0x84   :  { %v93_v30 = vpop.permute.xlu1 %92  ;;  %v101_v31 = vpop.permute.xlu0 %100 }
  0x85   :  { %v127_v43 = vmul.f32 %v401_v38, %v93_v30  ;;  %v129_v58 = vmul.f32 %v401_v38, %v101_v31 }
  0x88   :  { %v97_v32 = vpop.permute.xlu1 %96  ;;  %v109_v33 = vpop.permute.xlu0 %108 }
  0x89   :  { %v128_v46 = vmul.f32 %v401_v38, %v97_v32  ;;  %v131_v11 = vmul.f32 %v401_v38, %v109_v33 }
  0x8c   :  { %v117_v34 = vpop.permute.xlu0 %116 }
  0x8d   :  { %v57_v35 = vpop.permute.xlu1 %56  ;;  %v133_v21 = vmul.f32 %v401_v38, %v117_v34  ;;  %v208_v34 = vld [vmem:[%s656_s3 + $0x8] sm:$0xff] }
  0x8e   :  { %v86_v59 = vmul.f32 %v400_v39, %v57_v35 }
  0x91   :  { %v42_v36 = vpop.permute.xlu0 %41 }
  0x92   :  { %v105_v37 = vpop.permute.xlu1 %104  ;;  %v83_v41 = vmul.f32 %v400_v39, %v42_v36 }
  0x93   :  { %v130_v56 = vmul.f32 %v401_v38, %v105_v37  ;;  %v210_v37 = vld [vmem:[%s656_s3 + $0x18] sm:$0xff]  ;;  %s503_s3 = smov [#allocation3]  }
  0x94   :  { %v135_v47 = vadd.f32 %v127_v43, %v83_v41  ;;  %s392_s6 = sshll.u32 %s503_s3, 4  ;;  %s393_s6 = int_to_ptr.vmem [resolvable:$true] %s392_s6 }
  0x95   :  { %v47_v40 = vpop.permute.xlu0 %46  ;;  %v138_v63 = vadd.f32 %v130_v56, %v86_v59  ;;  %s477_s10 = scalar_lea.vmem %s393_s6, 16  ;;  %s481_s11 = scalar_lea.vmem %s393_s6, 32 }
  0x96   :  { %v84_v44 = vmul.f32 %v400_v39, %v47_v40  ;;  %p478_p0 = scmp.ne.s32.totalorder %s393_s6, %s477_s10  ;;  %p482_p1 = scmp.lt.s32.totalorder %s393_s6, %s393_s6 }
  0x97   :  { %v154_v42 = vpop.permute.xlu1 %153  ;;  %p483_p2 = scmp.lt.s32.totalorder %s481_s11, %s477_s10 }
  0x98   :  { %v191_v49 = vadd.f32 %v154_v42, %v135_v47  ;;  %v136_v50 = vadd.f32 %v128_v46, %v84_v44 }
  0x99   :  { %v52_v45 = vpop.permute.xlu0 %51  ;;  %p484_p3 = por %p483_p2, %p482_p1 }
  0x9a   :  { %v199_v54 = vmax.f32 %v191_v49, 0.0  ;;  %v85_v60 = vmul.f32 %v400_v39, %v52_v45 }
  0x9b   :  { %v62_v48 = vpop.permute.xlu1 %61  ;;  %p485_p4 = pnand %p484_p3, %p478_p0 }
  0x9c   :  { %v137_v1 = vadd.f32 %v129_v58, %v85_v60  ;;  %v87_v12 = vmul.f32 %v400_v39, %v62_v48 }
  0x9d   :  { %v159_v51 = vpop.permute.xlu0 %158 }
  0x9e   :  { %v192_v52 = vadd.f32 %v159_v51, %v136_v50  ;;  %v139_v17 = vadd.f32 %v131_v11, %v87_v12 }
  0x9f   :  { %v67_v53 = vpop.permute.xlu1 %66 }
  0xa0   :  { %v200_v55 = vmax.f32 %v192_v52, 0.0  ;;  %v88_v10 = vmul.f32 %v400_v39, %v67_v53 }
  0xa1   :  { %v169_v62 = vpop.permute.xlu0 %168 }
  0xa2   :  { %v440_v57 = vpack.c.bf16 %v200_v55, %v199_v54  ;;  %v194_v0 = vadd.f32 %v169_v62, %v138_v63 }
  0xa4   :  { %v113_v61 = vpop.permute.xlu1 %112  ;;  %441 = vmatprep.subr.bf16.mxu0 %v440_v57  ;;  %456 = vmatprep.subr.bf16.mxu1 %v440_v57  ;;  %v202_v4 = vmax.f32 %v194_v0, 0.0  ;;  %v380_v0 = vlaneseq }
  0xa5   :  { %443 = vmatpush3.bf16.msra.mxu0 %v440_v57  ;;  %460 = vmatpush3.bf16.msra.mxu1 %v440_v57  ;;  %v132_v9 = vmul.f32 %v401_v38, %v113_v61  ;;  %v179_v15 = vpop.permute.xlu0 %178 }
  0xa7   :  { %v140_v13 = vadd.f32 %v132_v9, %v88_v10 }
  0xa9   :  { %v164_v2 = vpop.permute.xlu1 %163  ;;  %v196_v16 = vadd.f32 %v179_v15, %v140_v13 }
  0xaa   :  { %v193_v3 = vadd.f32 %v164_v2, %v137_v1 }
  0xab   :  { %v204_v22 = vmax.f32 %v196_v16, 0.0 }
  0xac   :  { %v201_v5 = vmax.f32 %v193_v3, 0.0  ;;  %v381_v3 = vshrl.u32 %v380_v0, 7 }
  0xad   :  { %v72_v6 = vpop.permute.xlu1 %71 }
  0xae   :  { %v444_v7 = vpack.c.bf16 %v202_v4, %v201_v5  ;;  %v89_v19 = vmul.f32 %v400_v39, %v72_v6  ;;  %v382_v6 = vsub.s32 0, %v381_v3 }
  0xb0   :  { %445 = vmatprep.subr.bf16.mxu0 %v444_v7  ;;  %457 = vmatprep.subr.bf16.mxu1 %v444_v7  ;;  %v141_v28 = vadd.f32 %v133_v21, %v89_v19 }
  0xb1   :  { %v77_v8 = vpop.permute.xlu1 %76  ;;  %447 = vmatpush3.bf16.msra.mxu0 %v444_v7  ;;  %461 = vmatpush3.bf16.msra.mxu1 %v444_v7 }
  0xb2   :  { %v90_v26 = vmul.f32 %v400_v39, %v77_v8 }
  0xb6   :  { %v121_v14 = vpop.permute.xlu1 %120 }
  0xb7   :  { %v134_v23 = vmul.f32 %v401_v38, %v121_v14  ;;  %v218_v38 = vpop.permute.xlu0 %217 }
  0xb9   :  { %v142_v30 = vadd.f32 %v134_v23, %v90_v26 }
  0xbb   :  { %v174_v18 = vpop.permute.xlu1 %173  ;;  %v228_v40 = vpop.permute.xlu0 %227 }
  0xbc   :  { %v195_v20 = vadd.f32 %v174_v18, %v139_v17 }
  0xbe   :  { %v203_v24 = vmax.f32 %v195_v20, 0.0 }
  0xbf   :  { %v184_v25 = vpop.permute.xlu1 %183  ;;  %v344_v42 = vpop.permute.xlu0 %343 }
  0xc0   :  { %v448_v27 = vpack.c.bf16 %v204_v22, %v203_v24  ;;  %v197_v29 = vadd.f32 %v184_v25, %v141_v28 }
  0xc2   :  { %449 = vmatprep.subr.bf16.mxu0 %v448_v27  ;;  %458 = vmatprep.subr.bf16.mxu1 %v448_v27  ;;  %v205_v33 = vmax.f32 %v197_v29, 0.0 }
  0xc3   :  { %v189_v31 = vpop.permute.xlu1 %188  ;;  %451 = vmatpush3.bf16.msra.mxu0 %v448_v27  ;;  %462 = vmatpush3.bf16.msra.mxu1 %v448_v27  ;;  %v354_v58 = vpop.permute.xlu0 %353 }
  0xc4   :  { %v198_v32 = vadd.f32 %v189_v31, %v142_v30 }
  0xc6   :  { %v206_v35 = vmax.f32 %v198_v32, 0.0 }
  0xc7   :  { %v223_v39 = vpop.permute.xlu1 %222  ;;  %v378_v8 = vpop.permute.xlu0 %377 }
  0xc8   :  { %v452_v36 = vpack.c.bf16 %v206_v35, %v205_v33  ;;  %v383_v10 = vrot.slane %v378_v8, %v382_v6 }
  0xca   :  { %453 = vmatprep.subr.bf16.mxu0 %v452_v36  ;;  %459 = vmatprep.subr.bf16.mxu1 %v452_v36 }
  0xcb   :  { %455 = vmatpush3.bf16.msra.mxu0 %v452_v36  ;;  %463 = vmatpush3.bf16.msra.mxu1 %v452_v36  ;;  %v233_v41 = vpop.permute.xlu1 %232 }
  0xce   :  { %435 = vmatmul.mubr.msk.f32.vlgmr.msra.gmra.mrb[0].mxu0 %vm235_vm0, %v208_v34  ;;  %438 = vmatmul.mubr.msk.f32.vlgmr.msra.gmra.mrb[0].mxu1 %vm235_vm0, %v210_v37 }
  0xcf   :  { %v349_v51 = vpop.permute.xlu1 %348 }
  0xd3   :  { %v359_v61 = vpop.permute.xlu1 %358 }
 0x1a1   :  { %v436_v43 = vpop.f32.mrb[0].mxu0  ;;  %v439_v44 = vpop.f32.mrb[0].mxu1 }
 0x1a2   :  { %v320_v45 = vadd.f32 %v436_v43, %v223_v39  ;;  %v314_v46 = vpop.f32.mrb[1].mxu0  ;;  %v324_v47 = vpop.f32.mrb[1].mxu1  ;;  %v330_v48 = vadd.f32 %v439_v44, %v233_v41 }
 0x1a3   :  { %v315_v49 = vadd.f32 %v314_v46, %v218_v38  ;;  %v325_v50 = vadd.f32 %v324_v47, %v228_v40 }
 0x1a4   :  { %v334_v52 = vmax.f32 %v320_v45, 0.0  ;;  %v336_v56 = vmax.f32 %v330_v48, 0.0 }
 0x1a5   :  { %v333_v53 = vmax.f32 %v315_v49, 0.0  ;;  %v335_v54 = vmax.f32 %v325_v50, 0.0 }
 0x1a6   :  { %v362_v55 = vmul.f32 %v349_v51, %v334_v52  ;;  %v364_v62 = vmul.f32 %v359_v61, %v336_v56 }
 0x1a7   :  { %v361_v57 = vmul.f32 %v344_v42, %v333_v53  ;;  %v363_v60 = vmul.f32 %v354_v58, %v335_v54 }
 0x1a9   :  { %v365_v59 = vadd.f32 %v362_v55, %v361_v57 }
 0x1ab   :  { %v366_v63 = vadd.f32 %v365_v59, %v363_v60 }
 0x1ad   :  { %v367_v1 = vadd.f32 %v366_v63, %v364_v62 }
 0x1af   :  { %v368_v2 = vrot.slane %v367_v1, 4 }
 0x1b1   :  { %v369_v4 = vadd.f32 %v368_v2, %v367_v1 }
 0x1b3   :  { %v370_v5 = vrot.slane %v369_v4, 2 }
 0x1b5   :  { %v371_v7 = vadd.f32 %v370_v5, %v369_v4 }
 0x1b7   :  { %v372_v9 = vrot.slane %v371_v7, 1 }
 0x1b9   :  { %v373_v11 = vadd.f32 %v372_v9, %v371_v7 }
 0x1bb   :  { %v384_v12 = vadd.f32 %v383_v10, %v373_v11 }
 0x1bd   :  { %385 = vst [vmem:[#allocation3] sm:$0x1] %v384_v12 }
 0x1be   :  { %488 = shalt.err (!%p485_p4)
}
 0x1bf   :  { %s489_s14 = scalar_lea.hbm %s660_s7, 16 }
 0x1c0   :  { %p490_p5 = scmp.ne.s32.totalorder %s660_s7, %s489_s14  ;;  %p493_p6 = scmp.lt.u32.totalorder %s489_s14, %s660_s7 }
 0x1c2   :  { %p495_p7 = pnand %p493_p6, %p490_p5 }
 0x1c4   :  { %498 = shalt.err (!%p495_p7)
}
 0x1c5   :  { %395 = dma.vmem_to_hbm [thread:$0]  %s393_s6, 16, %s660_s7, [#allocation4]  }
 0x1c6   :  { %499 = dma.done.wait [#allocation4], 16  }
 0x1c7   :  { %500 = vsyncadd [#allocation4], 4294967280 }
 0x1c8   :  { %399 = vsyncpa [#allocation4], 1 }

</bundles_post_ra>
